<compile_context>
chip_gen: v5e
topology: v5e:2x2
jax: 0.10.0
libtpu: 0.0.40
codegen_flags: <defaults>
</compile_context>

<pallas_src>
import jax
import jax.numpy as jnp
from jax import lax
from jax.experimental import pallas as pl
from jax.experimental.pallas import tpu as pltpu

EPS = 1e-5  # PyTorch nn.LayerNorm default


# --------------------------------------------------------------------------
# Generation-aware VMEM budgets.
# --------------------------------------------------------------------------
def _detect_vmem_capacity_bytes():
    try:
        info = pltpu.get_tpu_info()
        cap = int(getattr(info, "vmem_capacity_bytes", 0) or 0)
        if cap > 0:
            return cap
    except Exception:
        pass
    return 64 << 20  # conservative fallback (v7x has the smallest VMEM)


_VMEM_CAPACITY = _detect_vmem_capacity_bytes()
_BIG_VMEM = _VMEM_CAPACITY >= (96 << 20)  # v5e / v6e 128-MiB parts

if _BIG_VMEM:
    _TILE_VMEM_BUDGET = 64 << 20        # bytes for pipelined row tiles + intermediates
    _VMEM_LIMIT_CAP = 96 << 20
    _MAX_FUSED_WBLOCK_BYTES = 16 << 20  # per-N-block weight slab budget for fusion
else:
    _TILE_VMEM_BUDGET = 24 << 20
    _VMEM_LIMIT_CAP = 48 << 20
    _MAX_FUSED_WBLOCK_BYTES = 8 << 20

_VMEM_LIMIT_FLOOR = 32 << 20
_MAX_ROW_TILE = 2048


# --------------------------------------------------------------------------
# Small helpers.
# --------------------------------------------------------------------------
def _sublane_multiple(dtype):
    return {4: 8, 2: 16, 1: 32}.get(jnp.dtype(dtype).itemsize, 8)


def _round_up(x, m):
    return ((x + m - 1) // m) * m


def _pick_row_tile(n_rows, per_row_bytes, sublane, resident_bytes):
    """Largest row tile whose pipelined buffers + f32 intermediates fit VMEM."""
    budget = max(_TILE_VMEM_BUDGET - resident_bytes, per_row_bytes * sublane)
    rt = budget // per_row_bytes
    rt = max(sublane, (rt // sublane) * sublane)
    rt = min(rt, _MAX_ROW_TILE, _round_up(n_rows, sublane))
    # Keep at least two grid steps on the (parallel) row axis so both v7x
    # TensorCores engage; ~0.35us/step overhead is negligible on 1-TC chips.
    if n_rows > sublane:
        half = max(sublane, _round_up(pl.cdiv(n_rows, 2), sublane))
        rt = min(rt, half)
    return int(rt)


def _vmem_limit(row_tile, per_row_bytes, resident_bytes):
    est = row_tile * per_row_bytes + resident_bytes + (8 << 20)
    return int(min(_VMEM_LIMIT_CAP, max(_VMEM_LIMIT_FLOOR, est)))


def _matmul_dtype(w_dtype):
    # Feed the MXU bf16 inputs with f32 accumulation (native fast path on
    # v5e/v6e/v7x) when the weights are f32; otherwise keep their dtype.
    dt = jnp.dtype(w_dtype)
    return jnp.dtype(jnp.bfloat16) if dt == jnp.dtype(jnp.float32) else dt


def _pick_tn(D, D_out_padded, mm_itemsize):
    """Largest MXU N block (multiple of 128, dividing padded dim_out) whose
    (D, tn) weight slab fits the fused-weight VMEM budget."""
    for tn in (512, 384, 256, 128):
        if (tn <= D_out_padded and D_out_padded % tn == 0
                and D * tn * mm_itemsize <= _MAX_FUSED_WBLOCK_BYTES):
            return tn
    return None


def _can_fuse(D, D_out, w_dtype):
    mm_item = jnp.dtype(_matmul_dtype(w_dtype)).itemsize
    return _pick_tn(D, _round_up(D_out, 128), mm_item) is not None


# --------------------------------------------------------------------------
# Kernels.
# --------------------------------------------------------------------------
def _layernorm_kernel(x_ref, g_ref, b_ref, o_ref):
    # One-pass mean/var: var = E[x^2] - mean^2 (clamped), both reductions
    # taken off the raw tile.
    x = x_ref[...].astype(jnp.float32)
    mean = jnp.mean(x, axis=-1, keepdims=True)
    meansq = jnp.mean(x * x, axis=-1, keepdims=True)
    var = jnp.maximum(meansq - mean * mean, 0.0)
    y = (x - mean) * lax.rsqrt(var + EPS)
    y = y * g_ref[...].astype(jnp.float32) + b_ref[...].astype(jnp.float32)
    o_ref[...] = y.astype(o_ref.dtype)


def _prenorm_linear_kernel(x_ref, g_ref, b_ref, w_ref, wb_ref, o_ref, y_ref):
    # LayerNorm once per row tile (j == 0); normalized tile stashed in the
    # MXU input dtype (bf16).  Each N block then runs bf16-in / f32-acc dot.
    @pl.when(pl.program_id(1) == 0)
    def _():
        x = x_ref[...].astype(jnp.float32)
        mean = jnp.mean(x, axis=-1, keepdims=True)
        meansq = jnp.mean(x * x, axis=-1, keepdims=True)
        var = jnp.maximum(meansq - mean * mean, 0.0)
        y = (x - mean) * lax.rsqrt(var + EPS)
        y = y * g_ref[...].astype(jnp.float32) + b_ref[...].astype(jnp.float32)
        y_ref[...] = y.astype(y_ref.dtype)

    out = jnp.dot(y_ref[...], w_ref[...], preferred_element_type=jnp.float32)
    out = out + wb_ref[...].astype(jnp.float32)
    o_ref[...] = out.astype(o_ref.dtype)


# --------------------------------------------------------------------------
# Wrappers.
# --------------------------------------------------------------------------
@jax.jit
def layernorm_pallas(x, gamma, beta):
    """LayerNorm over the last axis of x (any leading dims), in Pallas."""
    orig_shape = x.shape
    D = orig_shape[-1]
    x2 = x.reshape(-1, D)
    R = x2.shape[0]

    x_item = jnp.dtype(x.dtype).itemsize
    g_item = jnp.dtype(gamma.dtype).itemsize
    sublane = _sublane_multiple(x.dtype)

    # 2x double-buffered in + 2x out DMA buffers, plus the in-kernel f32
    # intermediates (upcast x, centered, y, pre-cast out).
    per_row = 2 * D * x_item + 2 * D * x_item + 4 * D * 4
    resident = 2 * D * g_item  # gamma + beta, single-buffered
    row_tile = _pick_row_tile(R, per_row, sublane, resident)
    n_tiles = pl.cdiv(R, row_tile)

    g2 = gamma.reshape(1, D)
    b2 = beta.reshape(1, D)

    out = pl.pallas_call(
        _layernorm_kernel,
        out_shape=jax.ShapeDtypeStruct((R, D), x.dtype),
        grid_spec=pltpu.PrefetchScalarGridSpec(
            num_scalar_prefetch=0,
            grid=(n_tiles,),
            in_specs=[
                pl.BlockSpec((row_tile, D), lambda i: (i, 0)),
                pl.BlockSpec((1, D), lambda i: (0, 0),
                             pipeline_mode=pl.Buffered(1)),
                pl.BlockSpec((1, D), lambda i: (0, 0),
                             pipeline_mode=pl.Buffered(1)),
            ],
            out_specs=pl.BlockSpec((row_tile, D), lambda i: (i, 0)),
        ),
        compiler_params=pltpu.CompilerParams(
            dimension_semantics=("parallel",),
            vmem_limit_bytes=_vmem_limit(row_tile, per_row, resident),
        ),
    )(x2, g2, b2)

    return out.reshape(orig_shape)


@jax.jit
def prenorm_linear_pallas(x, gamma, beta, w, wb):
    """Fused LayerNorm(dim) + Linear(dim -> dim_out), N-blocked over dim_out."""
    orig_shape = x.shape
    D = orig_shape[-1]
    D_out = w.shape[1]
    x2 = x.reshape(-1, D)
    R = x2.shape[0]
    out_dtype = x.dtype

    mm_dtype = _matmul_dtype(w.dtype)
    mm_item = jnp.dtype(mm_dtype).itemsize

    # Lane-dense output: pad dim_out up to a multiple of 128 (zero columns),
    # sliced back off after the kernel.
    D_out_p = _round_up(D_out, 128)
    w_mm = w.astype(mm_dtype)
    wb_p = wb
    if D_out_p != D_out:
        w_mm = jnp.pad(w_mm, ((0, 0), (0, D_out_p - D_out)))
        wb_p = jnp.pad(wb, ((0, D_out_p - D_out),))

    tn = _pick_tn(D, D_out_p, mm_item)
    assert tn is not None, "fusion gate should have rejected this weight"
    n_ntiles = D_out_p // tn

    x_item = jnp.dtype(x.dtype).itemsize
    out_item = jnp.dtype(out_dtype).itemsize
    g_item = jnp.dtype(gamma.dtype).itemsize
    wb_item = jnp.dtype(wb_p.dtype).itemsize
    sublane = max(_sublane_multiple(x.dtype), _sublane_multiple(out_dtype),
                  _sublane_multiple(mm_dtype))

    w_bufs = 1 if n_ntiles == 1 else 2
    per_row = (2 * D * x_item            # double-buffered x tile
               + 2 * tn * out_item       # double-buffered out tile
               + D * mm_item             # normalized-y VMEM scratch
               + (3 * D + tn) * 4)       # f32 intermediates in the kernel
    resident = (w_bufs * D * tn * mm_item
                + w_bufs * tn * wb_item
                + 2 * D * g_item)
    row_tile = _pick_row_tile(R, per_row, sublane, resident)
    n_rtiles = pl.cdiv(R, row_tile)

    g2 = gamma.reshape(1, D)
    b2 = beta.reshape(1, D)
    wb2 = wb_p.reshape(1, D_out_p)

    if n_ntiles == 1:
        w_spec = pl.BlockSpec((D, tn), lambda i, j: (0, j),
                              pipeline_mode=pl.Buffered(1))
        wb_spec = pl.BlockSpec((1, tn), lambda i, j: (0, j),
                               pipeline_mode=pl.Buffered(1))
    else:
        w_spec = pl.BlockSpec((D, tn), lambda i, j: (0, j))
        wb_spec = pl.BlockSpec((1, tn), lambda i, j: (0, j))

    out = pl.pallas_call(
        _prenorm_linear_kernel,
        out_shape=jax.ShapeDtypeStruct((R, D_out_p), out_dtype),
        grid_spec=pltpu.PrefetchScalarGridSpec(
            num_scalar_prefetch=0,
            grid=(n_rtiles, n_ntiles),   # N innermost so the y scratch is reused
            in_specs=[
                pl.BlockSpec((row_tile, D), lambda i, j: (i, 0)),
                pl.BlockSpec((1, D), lambda i, j: (0, 0),
                             pipeline_mode=pl.Buffered(1)),
                pl.BlockSpec((1, D), lambda i, j: (0, 0),
                             pipeline_mode=pl.Buffered(1)),
                w_spec,
                wb_spec,
            ],
            out_specs=pl.BlockSpec((row_tile, tn), lambda i, j: (i, j)),
            scratch_shapes=[pltpu.VMEM((row_tile, D), mm_dtype)],
        ),
        compiler_params=pltpu.CompilerParams(
            dimension_semantics=("parallel", "arbitrary"),
            vmem_limit_bytes=_vmem_limit(row_tile, per_row, resident),
        ),
    )(x2, g2, b2, w_mm, wb2)

    if D_out_p != D_out:
        out = out[:, :D_out]
    return out.reshape(orig_shape[:-1] + (D_out,))


# --------------------------------------------------------------------------
# Module.
# --------------------------------------------------------------------------
class Linear:
    """Deterministic Linear(dim_in -> dim_out), used as the `fn` in the demo."""

    def __init__(self, w, b):
        self.w = w  # (dim_in, dim_out)
        self.b = b  # (dim_out,)

    def __call__(self, x):
        return jnp.dot(x, self.w) + self.b


class PreNorm:
    """JAX/Pallas equivalent of the PyTorch PreNorm module."""

    def __init__(self, dim, fn, dtype=jnp.float32):
        # nn.LayerNorm(dim) init: weight = ones, bias = zeros.
        self.gamma = jnp.ones((dim,), dtype=dtype)
        self.beta = jnp.zeros((dim,), dtype=dtype)
        self.dim = dim
        self.fn = fn

    def __call__(self, x, **kwargs):
        fn = self.fn
        if (isinstance(fn, Linear) and not kwargs
                and _can_fuse(self.dim, fn.w.shape[1], fn.w.dtype)):
            # Fused path: LN + Linear in one kernel, no HBM round trip for
            # the LN output; matmul runs bf16-in / f32-acc on the MXU.
            return prenorm_linear_pallas(x, self.gamma, self.beta, fn.w, fn.b)
        # TODO(synk): arbitrary `fn` modules cannot be fused in general;
        # run them as plain JAX on the Pallas LayerNorm output.
        return fn(layernorm_pallas(x, self.gamma, self.beta), **kwargs)


def _reference_layernorm(x, gamma, beta):
    mean = jnp.mean(x, axis=-1, keepdims=True)
    var = jnp.mean((x - mean) ** 2, axis=-1, keepdims=True)
    return (x - mean) / jnp.sqrt(var + EPS) * gamma + beta


if __name__ == "__main__":
    key = jax.random.PRNGKey(0)
    batch, seq, dim = 2, 8, 128  # lane-dense last dim (multiple of 128)

    kx, kw, kb = jax.random.split(key, 3)
    x = jax.random.normal(kx, (batch, seq, dim), dtype=jnp.float32)

    w = jax.random.normal(kw, (dim, dim), dtype=jnp.float32) * (1.0 / dim ** 0.5)
    b = jax.random.normal(kb, (dim,), dtype=jnp.float32) * 0.01

    module = PreNorm(dim, Linear(w, b))
    out = jax.block_until_ready(module(x))
    assert out.shape == (batch, seq, dim)

    # Tight check of the LayerNorm kernel alone.
    ln = jax.block_until_ready(layernorm_pallas(x, module.gamma, module.beta))
    ln_ref = _reference_layernorm(x, module.gamma, module.beta)
    assert jnp.allclose(ln, ln_ref, atol=1e-5, rtol=1e-5), "LayerNorm mismatch"

    # Fused LN+Linear vs pure-JAX f32 reference.  The in-kernel matmul runs
    # bf16-in / f32-accumulate on the MXU, so allow bf16-level tolerance.
    ref = jnp.dot(ln_ref, w) + b
    assert jnp.allclose(out, ref, atol=2e-2, rtol=2e-2), "PreNorm mismatch vs reference"

    print("KERNEL_OK")
</pallas_src>

<mosaic_0001>
module attributes {stable_mosaic.version = 11 : i64} {
  func.func @_prenorm_linear_kernel(%arg0: i32, %arg1: i32, %arg2: memref<16x128xf32, #tpu.memory_space<vmem>>, %arg3: memref<1x128xf32, #tpu.memory_space<vmem>>, %arg4: memref<1x128xf32, #tpu.memory_space<vmem>>, %arg5: memref<128x128xbf16, #tpu.memory_space<vmem>>, %arg6: memref<1x128xf32, #tpu.memory_space<vmem>>, %arg7: memref<16x128xf32, #tpu.memory_space<vmem>>, %arg8: memref<16x128xbf16, #tpu.memory_space<vmem>>) attributes {dimension_semantics = [#tpu.dimension_semantics<parallel>, #tpu.dimension_semantics<arbitrary>], iteration_bounds = array<i64: 1, 1>, scalar_prefetch = 0 : i64, scratch_operands = 1 : i64, tpu.core_type = #tpu.core_type<tc>, window_params = [{transform_indices = @transform_0, window_bounds = array<i64: 16, 128>}, {pipeline_mode = #tpu.pipeline_mode<synchronous>, transform_indices = @transform_1, window_bounds = array<i64: 1, 128>}, {pipeline_mode = #tpu.pipeline_mode<synchronous>, transform_indices = @transform_2, window_bounds = array<i64: 1, 128>}, {pipeline_mode = #tpu.pipeline_mode<synchronous>, transform_indices = @transform_3, window_bounds = array<i64: 128, 128>}, {pipeline_mode = #tpu.pipeline_mode<synchronous>, transform_indices = @transform_4, window_bounds = array<i64: 1, 128>}, {transform_indices = @transform_5, window_bounds = array<i64: 16, 128>}]} {
    %c0_i32 = arith.constant 0 : i32
    %0 = arith.cmpi eq, %arg1, %c0_i32 : i32
    %1 = arith.extui %0 : i1 to i32
    %c0_i32_0 = arith.constant 0 : i32
    %2 = arith.cmpi ne, %1, %c0_i32_0 : i32
    scf.if %2 {
      %c0_8 = arith.constant 0 : index
      %c0_9 = arith.constant 0 : index
      %10 = vector.load %arg2[%c0_8, %c0_9] : memref<16x128xf32, #tpu.memory_space<vmem>>, vector<16x128xf32>
      %cst_10 = arith.constant dense<0.000000e+00> : vector<16xf32>
      %11 = vector.multi_reduction <add>, %10, %cst_10 [1] : vector<16x128xf32> to vector<16xf32>
      %12 = vector.shape_cast %11 : vector<16xf32> to vector<16x1xf32>
      %cst_11 = arith.constant 1.280000e+02 : f32
      %13 = vector.broadcast %cst_11 : f32 to vector<16x1xf32>
      %14 = arith.divf %12, %13 : vector<16x1xf32>
      %15 = arith.mulf %10, %10 : vector<16x128xf32>
      %cst_12 = arith.constant dense<0.000000e+00> : vector<16xf32>
      %16 = vector.multi_reduction <add>, %15, %cst_12 [1] : vector<16x128xf32> to vector<16xf32>
      %17 = vector.shape_cast %16 : vector<16xf32> to vector<16x1xf32>
      %cst_13 = arith.constant 1.280000e+02 : f32
      %18 = vector.broadcast %cst_13 : f32 to vector<16x1xf32>
      %19 = arith.divf %17, %18 : vector<16x1xf32>
      %20 = arith.mulf %14, %14 : vector<16x1xf32>
      %21 = arith.subf %19, %20 : vector<16x1xf32>
      %cst_14 = arith.constant 0.000000e+00 : f32
      %22 = vector.broadcast %cst_14 : f32 to vector<16x1xf32>
      %23 = arith.maximumf %21, %22 : vector<16x1xf32>
      %24 = vector.broadcast %14 : vector<16x1xf32> to vector<16x128xf32>
      %25 = arith.subf %10, %24 : vector<16x128xf32>
      %cst_15 = arith.constant 9.99999974E-6 : f32
      %26 = vector.broadcast %cst_15 : f32 to vector<16x1xf32>
      %27 = arith.addf %23, %26 : vector<16x1xf32>
      %28 = math.rsqrt %27 : vector<16x1xf32>
      %29 = vector.broadcast %28 : vector<16x1xf32> to vector<16x128xf32>
      %30 = arith.mulf %25, %29 : vector<16x128xf32>
      %c0_16 = arith.constant 0 : index
      %c0_17 = arith.constant 0 : index
      %31 = vector.load %arg3[%c0_16, %c0_17] : memref<1x128xf32, #tpu.memory_space<vmem>>, vector<1x128xf32>
      %32 = vector.broadcast %31 : vector<1x128xf32> to vector<16x128xf32>
      %33 = arith.mulf %30, %32 : vector<16x128xf32>
      %c0_18 = arith.constant 0 : index
      %c0_19 = arith.constant 0 : index
      %34 = vector.load %arg4[%c0_18, %c0_19] : memref<1x128xf32, #tpu.memory_space<vmem>>, vector<1x128xf32>
      %35 = vector.broadcast %34 : vector<1x128xf32> to vector<16x128xf32>
      %36 = arith.addf %33, %35 : vector<16x128xf32>
      %37 = arith.truncf %36 : vector<16x128xf32> to vector<16x128xbf16>
      %c0_20 = arith.constant 0 : index
      %c0_21 = arith.constant 0 : index
      %38 = vector.load %arg8[%c0_20, %c0_21] : memref<16x128xbf16, #tpu.memory_space<vmem>>, vector<16x128xbf16>
      tpu.vector_store %arg8[%c0_20, %c0_21], %37 {strides = array<i32>} : memref<16x128xbf16, #tpu.memory_space<vmem>>, vector<16x128xbf16>,
    } else {
    }
    %c0 = arith.constant 0 : index
    %c0_1 = arith.constant 0 : index
    %3 = vector.load %arg8[%c0, %c0_1] : memref<16x128xbf16, #tpu.memory_space<vmem>>, vector<16x128xbf16>
    %c0_2 = arith.constant 0 : index
    %c0_3 = arith.constant 0 : index
    %4 = vector.load %arg5[%c0_2, %c0_3] : memref<128x128xbf16, #tpu.memory_space<vmem>>, vector<128x128xbf16>
    %cst = arith.constant dense<0.000000e+00> : vector<16x128xf32>
    %5 = tpu.matmul %3, %4, %cst {dimension_numbers = #tpu.dot_dimension_numbers<[1], [0], [0], [1], [0, 0, 1, 1], [], []>} : vector<16x128xbf16>, vector<128x128xbf16>, vector<16x128xf32> -> vector<16x128xf32>
    %c0_4 = arith.constant 0 : index
    %c0_5 = arith.constant 0 : index
    %6 = vector.load %arg6[%c0_4, %c0_5] : memref<1x128xf32, #tpu.memory_space<vmem>>, vector<1x128xf32>
    %7 = vector.broadcast %6 : vector<1x128xf32> to vector<16x128xf32>
    %8 = arith.addf %5, %7 : vector<16x128xf32>
    %c0_6 = arith.constant 0 : index
    %c0_7 = arith.constant 0 : index
    %9 = vector.load %arg7[%c0_6, %c0_7] : memref<16x128xf32, #tpu.memory_space<vmem>>, vector<16x128xf32>
    tpu.vector_store %arg7[%c0_6, %c0_7], %8 {strides = array<i32>} : memref<16x128xf32, #tpu.memory_space<vmem>>, vector<16x128xf32>,
    return
  }
  func.func @transform_0(%arg0: i32, %arg1: i32) -> (i32, i32) {
    %c0_i32 = arith.constant 0 : i32
    %c0_i32_0 = arith.constant 0 : i32
    return %arg0, %c0_i32 : i32, i32
  }
  func.func @transform_1(%arg0: i32, %arg1: i32) -> (i32, i32) {
    %c0_i32 = arith.constant 0 : i32
    %c0_i32_0 = arith.constant 0 : i32
    %c0_i32_1 = arith.constant 0 : i32
    return %c0_i32, %c0_i32_0 : i32, i32
  }
  func.func @transform_2(%arg0: i32, %arg1: i32) -> (i32, i32) {
    %c0_i32 = arith.constant 0 : i32
    %c0_i32_0 = arith.constant 0 : i32
    %c0_i32_1 = arith.constant 0 : i32
    return %c0_i32, %c0_i32_0 : i32, i32
  }
  func.func @transform_3(%arg0: i32, %arg1: i32) -> (i32, i32) {
    %c0_i32 = arith.constant 0 : i32
    %c0_i32_0 = arith.constant 0 : i32
    return %c0_i32, %arg1 : i32, i32
  }
  func.func @transform_4(%arg0: i32, %arg1: i32) -> (i32, i32) {
    %c0_i32 = arith.constant 0 : i32
    %c0_i32_0 = arith.constant 0 : i32
    return %c0_i32, %arg1 : i32, i32
  }
  func.func @transform_5(%arg0: i32, %arg1: i32) -> (i32, i32) {
    %c0_i32 = arith.constant 0 : i32
    return %arg0, %arg1 : i32, i32
  }
}

</mosaic_0001>

<bundles_post_ra>
// kernel: prenorm_linear_pallas.1
= control target key start
LH: loop header
LB: loop body
LE: loop exit
PB: predicated region body
PF: predicated region fallthrough
CT: control target
= control target key end

     0   :  { %s383_s0 = inlined_call_operand.vmem [shape: f32[16,128], index: 0, kind: input, shape index: {}]   ;;  %s384_s1 = inlined_call_operand.vmem [shape: f32[1,128], index: 1, kind: input, shape index: {}]   ;;  %s385_s2 = inlined_call_operand.vmem [shape: f32[1,128], index: 2, kind: input, shape index: {}]   ;;  %s386_s3 = inlined_call_operand.vmem [shape: bf16[128,128], index: 3, kind: input, shape index: {}]   ;;  %s387_s4 = inlined_call_operand.vmem [shape: f32[1,128], index: 4, kind: input, shape index: {}]   ;;  %s388_s5 = inlined_call_operand.hbm [shape: f32[16,128], index: 5, kind: output, shape index: {}]  }
   0x1   :  { %v332_v0 = vld [vmem:[%s383_s0] sm:$0xff] }
   0x2   :  { %27 = vadd.xlane.f32.xlu0 %v332_v0  ;;  %v40_v1 = vmul.f32 %v332_v0, %v332_v0 }
   0x3   :  { %10 = vsyncpa [#allocation4], 0  ;;  %v340_v2 = vld [vmem:[%s383_s0 + $0x8] sm:$0xff]  ;;  %v295_v4 = vmov 128.0   ;;  %v250_v9 = vld [vmem:[%s386_s3 + $0x38] sm:$0xff]  ;;  %s296_s16 = smov [#allocation3]  }
   0x4   :  { %42 = vadd.xlane.f32.xlu1 %v40_v1  ;;  %v41_v3 = vmul.f32 %v340_v2, %v340_v2  ;;  %263 = vrcp.f32 %v295_v4  ;;  %172 = vmatpush.bf16.msra.mxu0 %v250_v9  ;;  %v249_v11 = vld [vmem:[%s386_s3 + $0x30] sm:$0xff]  ;;  %v248_v13 = vld [vmem:[%s386_s3 + $0x28] sm:$0xff]  ;;  %v247_v17 = vld [vmem:[%s386_s3 + $0x20] sm:$0xff]  ;;  %s192_s17 = sshll.u32 %s296_s16, 4  ;;  %s194_s19 = sshll.u32 %s388_s5, 4  ;;  %s193_s17 = int_to_ptr.vmem [resolvable:$true] %s192_s17  ;;  %s195_s19 = int_to_ptr.hbm [resolvable:$true] %s194_s19 }
   0x5   :  { %v246_v21 = vld [vmem:[%s386_s3 + $0x18] sm:$0xff]  ;;  %v245_v27 = vld [vmem:[%s386_s3 + $0x10] sm:$0xff]  ;;  %v244_v31 = vld [vmem:[%s386_s3 + $0x8] sm:$0xff]  ;;  %s297_s20 = smov 128   ;;  %s298_s21 = smov 8  }
   0x6   :  { %v243_v33 = vld [vmem:[%s386_s3] sm:$0xff] }
   0x7   :  { %v260_v48 = vld [vmem:[%s384_s1] ss:$0 sm:$0xff] }
   0x8   :  { %173 = vmatpush.bf16.msra.mxu0 %v249_v11  ;;  %v261_v53 = vld [vmem:[%s385_s2] ss:$0 sm:$0xff] }
   0x9   :  { %v262_v61 = vld [vmem:[%s387_s4] ss:$0 sm:$0xff] }
   0xa   :  { %29 = vadd.xlane.f32.xlu0 %v340_v2  ;;  %v264_v5 = vpop.eup %263 }
   0xb   :  { %v32_v6 = vmul.f32 128.0, %v264_v5  ;;  %vm36_vm0 = vweird.f32 %v264_v5 }
   0xc   :  { %44 = vadd.xlane.f32.xlu1 %v41_v3  ;;  %174 = vmatpush.bf16.msra.mxu0 %v248_v13 }
   0xd   :  { %v33_v7 = vsub.f32 1.0, %v32_v6 }
   0xf   :  { %v34_v8 = vmul.f32 %v264_v5, %v33_v7 }
  0x10   :  { %175 = vmatpush.bf16.msra.mxu0 %v247_v17 }
  0x11   :  { %v35_v10 = vadd.f32 %v264_v5, %v34_v8 }
  0x13   :  { %v37_v12 = vsel %vm36_vm0, %v264_v5, %v35_v10 }
  0x14   :  { %176 = vmatpush.bf16.msra.mxu0 %v246_v21 }
  0x18   :  { %177 = vmatpush.bf16.msra.mxu0 %v245_v27 }
  0x1c   :  { %178 = vmatpush.bf16.msra.mxu0 %v244_v31 }
  0x20   :  { %179 = vmatpush.bf16.msra.mxu0 %v243_v33 }
  0x75   :  { %v28_v14 = vpop.xlane.xlu0 %27 }
  0x76   :  { %v38_v15 = vmul.f32 %v37_v12, %v28_v14 }
  0x77   :  { %v43_v16 = vpop.xlane.xlu1 %42 }
  0x78   :  { %v48_v18 = vmul.f32 %v38_v15, %v38_v15  ;;  %v46_v19 = vmul.f32 %v43_v16, %v37_v12  ;;  %v54_v46 = vsub.f32 %v332_v0, %v38_v15 }
  0x7a   :  { %v50_v20 = vsub.f32 %v46_v19, %v48_v18 }
  0x7c   :  { %v52_v22 = vmax.f32 %v50_v20, 0.0 }
  0x7d   :  { %v30_v23 = vpop.xlane.xlu0 %29 }
  0x7e   :  { %v56_v24 = vadd.f32 1e-05, %v52_v22  ;;  %v39_v25 = vmul.f32 %v37_v12, %v30_v23 }
  0x7f   :  { %v45_v26 = vpop.xlane.xlu1 %44 }
  0x80   :  { %265 = vrsqrt.f32 %v56_v24  ;;  %v49_v28 = vmul.f32 %v39_v25, %v39_v25  ;;  %v47_v29 = vmul.f32 %v45_v26, %v37_v12  ;;  %vm64_vm2 = vweird.f32 %v56_v24 }
  0x81   :  { %v55_v51 = vsub.f32 %v340_v2, %v39_v25 }
  0x82   :  { %v51_v30 = vsub.f32 %v47_v29, %v49_v28 }
  0x84   :  { %v53_v32 = vmax.f32 %v51_v30, 0.0 }
  0x86   :  { %v266_v34 = vpop.eup %265  ;;  %v57_v36 = vadd.f32 1e-05, %v53_v32 }
  0x87   :  { %v59_v35 = vmul.f32 %v266_v34, %v56_v24  ;;  %vm65_vm1 = vweird.f32 %v266_v34 }
  0x88   :  { %267 = vrsqrt.f32 %v57_v36  ;;  %vm66_vm3 = vmor %vm64_vm2, %vm65_vm1  ;;  %vm74_vm5 = vweird.f32 %v57_v36 }
  0x89   :  { %v60_v37 = vmul.f32 %v266_v34, %v59_v35 }
  0x8b   :  { %v61_v38 = vmul.f32 0.5, %v60_v37 }
  0x8d   :  { %v62_v39 = vsub.f32 1.5, %v61_v38 }
  0x8e   :  { %v268_v40 = vpop.eup %267 }
  0x8f   :  { %v63_v41 = vmul.f32 %v266_v34, %v62_v39  ;;  %v69_v42 = vmul.f32 %v268_v40, %v57_v36  ;;  %vm75_vm4 = vweird.f32 %v268_v40 }
  0x90   :  { %vm76_vm6 = vmor %vm74_vm5, %vm75_vm4 }
  0x91   :  { %v70_v43 = vmul.f32 %v268_v40, %v69_v42  ;;  %v67_v44 = vsel %vm66_vm3, %v266_v34, %v63_v41 }
  0x92   :  { %v78_v49 = vmul.f32 %v67_v44, %v54_v46 }
  0x93   :  { %v71_v45 = vmul.f32 0.5, %v70_v43 }
  0x94   :  { %v84_v54 = vmul.f32 %v260_v48, %v78_v49 }
  0x95   :  { %v72_v47 = vsub.f32 1.5, %v71_v45 }
  0x96   :  { %v90_v57 = vadd.f32 %v261_v53, %v84_v54 }
  0x97   :  { %v73_v50 = vmul.f32 %v268_v40, %v72_v47 }
  0x99   :  { %v77_v52 = vsel %vm76_vm6, %v268_v40, %v73_v50 }
  0x9a   :  { %v79_v55 = vmul.f32 %v77_v52, %v55_v51 }
  0x9c   :  { %v85_v56 = vmul.f32 %v260_v48, %v79_v55 }
  0x9e   :  { %v91_v58 = vadd.f32 %v261_v53, %v85_v56 }
  0xa0   :  { %v254_v59 = vpack.c.bf16 %v91_v58, %v90_v57 }
  0xa2   :  { %255 = vst [vmem:[#allocation2] sm:$0xff] %v254_v59  }
  0xa9   :  { %v242_v60 = vld [vmem:[#allocation2] sm:$0xff] }
  0xaa   :  { %180 = vmatmul.bf16.vlgmr.msra.gmra.mxu0 %v242_v60 }
 0x127   :  { %v181_v62 = vpop.f32.mrf.mxu0 }
 0x128   :  { %v182_v63 = vadd.f32 %v262_v61, %v181_v62 }
 0x12a   :  { %186 = vst [vmem:[#allocation3] sm:$0xff] %v182_v63 }
 0x12f   :  { %v183_v0 = vpop.f32.mrf.mxu0 }
 0x130   :  { %v184_v1 = vadd.f32 %v262_v61, %v183_v0 }
 0x132   :  { %187 = vst [vmem:[#allocation3 + $0x8] sm:$0xff] %v184_v1 }
 0x133   :  { %200 = dma.vmem_to_hbm [thread:$0]  %s193_s17, 256, %s195_s19, [#allocation4], %s297_s20, %s297_s20, %s298_s21  }
 0x134   :  { %293 = dma.done.wait [#allocation4], 256  }
 0x135   :  { %294 = vsyncadd [#allocation4], 4294967040 }
 0x136   :  { %205 = vsyncpa [#allocation4], 1 }

</bundles_post_ra>
